<compile_context>
chip_gen: v7x
topology: tpu7x:2x2x1
jax: 0.10.0
libtpu: 0.0.40
codegen_flags: <defaults>
</compile_context>

<pallas_src>
import numpy as np
import jax
import jax.numpy as jnp
from jax import lax
from jax.experimental import pallas as pl
from jax.experimental.pallas import tpu as pltpu

BN_EPS = 1e-5  # torch.nn.BatchNorm1d default


# ---------------------------------------------------------------------------
# Kernel 1: tiny batch-dependent tensor network -> y = x @ F2^T  (B, de)
# ---------------------------------------------------------------------------
def tucker_y_kernel(e1_ref, r_ref, t_ref, F0_ref, F1_ref, F2_ref, F3_ref,
                    bne_ref, b3r_ref, ds3_ref, bn2_ref, rrep_ref, ssum_ref,
                    bnp_ref, y_ref):
    # bne (folded eval BatchNorm) + input_dropout (identity in eval).
    e1 = e1_ref[...] * bne_ref[0:1, :] + bne_ref[1:2, :]                         # (B, de)

    fr = jnp.dot(r_ref[...], F0_ref[...], preferred_element_type=jnp.float32)    # (B, p)
    fe1 = jnp.dot(e1, F1_ref[...], preferred_element_type=jnp.float32)           # (B, p)
    ft = jnp.dot(t_ref[...], F3_ref[...], preferred_element_type=jnp.float32)    # (B, p)

    # fr @ I.view(p, p^3) -> bnp3 -> hidden_dropout1 -> bmm(fe1, ...) collapses
    # analytically (the CPD core only hits the super-diagonal) into two tiny
    # lane-dense matmuls:
    #   x2[b, m] = sum_i fe1[b,i]*bias3[i*p^2 + m]
    #            + fe1[b,i]*fr[b,i]*scale3_diag[i]  at m = i*(p+1)
    x2 = (jnp.dot(fe1, b3r_ref[...], preferred_element_type=jnp.float32)
          + jnp.dot(fe1 * fr, ds3_ref[...], preferred_element_type=jnp.float32))  # (B, p^2)

    # bnp2 (folded) + hidden_dropout2 (identity).
    x2 = x2 * bn2_ref[0:1, :] + bn2_ref[1:2, :]

    # bmm(x.view(B,p,p), ft.view(B,p,1)) kept 2-D & lane-dense (no reshape):
    #   ft_rep[b, j*p+k] = ft[b, k]                 (replicate via R = tile(I_p))
    #   x1[b, j] = sum_k (x2 * ft_rep)[b, j*p+k]    (group-sum via S = repeat(I_p))
    ft_rep = jnp.dot(ft, rrep_ref[...], preferred_element_type=jnp.float32)       # (B, p^2)
    x1 = jnp.dot(x2 * ft_rep, ssum_ref[...], preferred_element_type=jnp.float32)  # (B, p)

    # bnp (folded) + hidden_dropout3 (identity).
    x1 = x1 * bnp_ref[0:1, :] + bnp_ref[1:2, :]

    # y = x @ F2^T so the logits kernel can stream E directly (FE never built).
    y_ref[...] = lax.dot_general(x1, F2_ref[...],
                                 dimension_numbers=(((1,), (1,)), ((), ())),
                                 preferred_element_type=jnp.float32)


# ---------------------------------------------------------------------------
# Kernel 2: pred tile = sigmoid(y @ E_tile^T) — the only big (HBM-bound) op.
# ---------------------------------------------------------------------------
def tucker_logits_kernel(y_ref, e_ref, out_ref):
    logits = lax.dot_general(y_ref[...], e_ref[...],
                             dimension_numbers=(((1,), (1,)), ((), ())),
                             preferred_element_type=jnp.float32)
    # TODO(synk): at production batch sizes, fuse the downstream consumer
    # (BCE loss / top-k) here instead of writing the full (B, ne) probabilities.
    out_ref[...] = jax.nn.sigmoid(logits).astype(out_ref.dtype)


# ---------------------------------------------------------------------------
# Host-side constant preparation (eval-mode BN fold + structural selectors)
# ---------------------------------------------------------------------------
def fold_bn(gamma, beta, mean, var):
    scale = gamma / jnp.sqrt(var + BN_EPS)
    bias = beta - mean * scale
    return scale, bias


def prepare_constants(bne_raw, bnp3_raw, bnp2_raw, bnp_raw, p):
    se, be = fold_bn(*bne_raw)
    bne_sb = jnp.stack([se, be])                                   # (2, de)

    s3, b3 = fold_bn(*bnp3_raw)
    b3r = b3.reshape(p, p * p)                                     # (p, p^2)
    i = jnp.arange(p)
    # scale3 only matters on the CPD super-diagonal (it multiplies zeros elsewhere).
    ds3 = jnp.zeros((p, p * p), jnp.float32).at[i, i * (p + 1)].set(
        s3[i * (p * p + p + 1)])                                   # (p, p^2)

    s2, b2 = fold_bn(*bnp2_raw)
    bn2_sb = jnp.stack([s2, b2])                                   # (2, p^2)

    eye = jnp.eye(p, dtype=jnp.float32)
    rrep = jnp.tile(eye, (1, p))                                   # (p, p^2): R[k, j*p+k]=1
    ssum = jnp.repeat(eye, p, axis=0)                              # (p^2, p): S[j*p+k, j]=1

    sp, bp = fold_bn(*bnp_raw)
    bnp_sb = jnp.stack([sp, bp])                                   # (2, p)
    return bne_sb, b3r, ds3, bn2_sb, rrep, ssum, bnp_sb


# ---------------------------------------------------------------------------
# Forward wrapper
# ---------------------------------------------------------------------------
def tucker_cpd_forward(e1, r, t, E, F0, F1, F2, F3,
                       bne_sb, b3r, ds3, bn2_sb, rrep, ssum, bnp_sb,
                       *, tile_ne=2048, compute_dtype=jnp.bfloat16,
                       out_dtype=jnp.float32):
    """Eval-mode TuckERCPD forward. e1/r/t are already-gathered embedding rows."""
    B, de = e1.shape
    ne = E.shape[0]

    # ---- Stage 1: tiny batch-dependent network -> y = x @ F2^T  (B, de) ------
    y = pl.pallas_call(
        tucker_y_kernel,
        out_shape=jax.ShapeDtypeStruct((B, de), jnp.float32),
    )(e1, r, t, F0, F1, F2, F3, bne_sb, b3r, ds3, bn2_sb, rrep, ssum, bnp_sb)

    # ---- Stage 2: pred = sigmoid(y @ E^T), streaming raw E tiles --------------
    # Lane-dense tile (multiple of 128); ragged last tile handled by Pallas's
    # block-boundary masking, so NO host-side pad / copy of E, no output slice.
    tile = int(min(int(tile_ne), pl.cdiv(ne, 128) * 128))
    tile = max(128, (tile // 128) * 128)
    grid = pl.cdiv(ne, tile)

    yk = y.astype(compute_dtype)
    Ek = E if E.dtype == compute_dtype else E.astype(compute_dtype)
    # NOTE: E is a static model parameter — in a real serving/training loop cast
    # it to bf16 once outside so the conversion pass is amortized across calls.

    out = pl.pallas_call(
        tucker_logits_kernel,
        out_shape=jax.ShapeDtypeStruct((B, ne), out_dtype),
        grid=(grid,),
        in_specs=[
            pl.BlockSpec((B, de), lambda j: (0, 0)),      # y stays resident in VMEM
            pl.BlockSpec((tile, de), lambda j: (j, 0)),   # streamed E tiles (double-buffered)
        ],
        out_specs=pl.BlockSpec((B, tile), lambda j: (0, j)),
        compiler_params=pltpu.CompilerParams(
            dimension_semantics=("parallel",),            # v7x: tiles split across 2 TCs
        ),
    )(yk, Ek)
    return out


if __name__ == "__main__":
    # Small, deterministic problem sizes consistent with the module.
    ne, nr, nt = 3000, 11, 13       # entities / relations / time points
    de = dr = dt = 16               # embedding dims
    p = min(de, dr, dt)             # CPD rank
    p2, p3 = p * p, p ** 3
    B = 8                           # batch (raise to >=128 in production)

    key = jax.random.PRNGKey(0)
    ks = jax.random.split(key, 16)

    E = jax.random.normal(ks[0], (ne, de), jnp.float32) * 0.1
    R = jax.random.normal(ks[1], (nr, dr), jnp.float32) * 0.1
    T = jax.random.normal(ks[2], (nt, dt), jnp.float32) * 0.1
    F0 = jax.random.uniform(ks[3], (dr, p), jnp.float32, -0.1, 0.1)
    F1 = jax.random.uniform(ks[4], (de, p), jnp.float32, -0.1, 0.1)
    F2 = jax.random.uniform(ks[5], (de, p), jnp.float32, -0.1, 0.1)
    F3 = jax.random.uniform(ks[6], (dt, p), jnp.float32, -0.1, 0.1)

    # Non-trivial eval-mode BatchNorm1d parameters / running statistics.
    def bn_raw(k, F):
        kg, kb, km, kv = jax.random.split(k, 4)
        gamma = jax.random.uniform(kg, (F,), jnp.float32, 0.5, 1.5)
        beta = jax.random.normal(kb, (F,), jnp.float32) * 0.1
        mean = jax.random.normal(km, (F,), jnp.float32) * 0.1
        var = jax.random.uniform(kv, (F,), jnp.float32, 0.5, 1.5)
        return gamma, beta, mean, var

    bne_raw = bn_raw(ks[7], de)
    bnp3_raw = bn_raw(ks[8], p3)
    bnp2_raw = bn_raw(ks[9], p2)
    bnp_raw = bn_raw(ks[10], p)

    consts = prepare_constants(bne_raw, bnp3_raw, bnp2_raw, bnp_raw, p)

    # Index inputs + embedding gathers (glue, plain JAX; out of kernel scope).
    e1_idx = jax.random.randint(ks[11], (B,), 0, ne)
    r_idx = jax.random.randint(ks[12], (B,), 0, nr)
    t_idx = jax.random.randint(ks[13], (B,), 0, nt)
    e1 = E[e1_idx]
    r = R[r_idx]
    t = T[t_idx]

    # f32 path (tight numerical check) + default bf16-streaming path (loose check).
    out_f32 = jax.block_until_ready(tucker_cpd_forward(
        e1, r, t, E, F0, F1, F2, F3, *consts, compute_dtype=jnp.float32))
    out_bf16 = jax.block_until_ready(tucker_cpd_forward(
        e1, r, t, E, F0, F1, F2, F3, *consts))

    # Pure-JAX reference mirroring the PyTorch forward (eval mode).
    def bn_eval(x, raw):
        gamma, beta, mean, var = raw
        return (x - mean) / jnp.sqrt(var + BN_EPS) * gamma + beta

    I_np = np.zeros((p, p3), np.float32)
    for i in range(p):
        I_np[i, i * p2 + i * p + i] = 1.0                  # I.view(p, p^3)
    I_flat = jnp.asarray(I_np)

    e1n = bn_eval(e1, bne_raw)
    fr = r @ F0
    fe1 = e1n @ F1
    FE = E @ F2
    ft = t @ F3
    xr = fr @ I_flat                                       # (B, p^3)
    xr = bn_eval(xr, bnp3_raw).reshape(B, p, p2)
    xr = jnp.einsum('bi,bij->bj', fe1, xr)
    xr = bn_eval(xr, bnp2_raw).reshape(B, p, p)
    xr = jnp.einsum('bij,bj->bi', xr, ft)
    xr = bn_eval(xr, bnp_raw)
    ref = jax.nn.sigmoid(xr @ FE.T)

    assert np.allclose(np.asarray(out_f32), np.asarray(ref), atol=1e-4, rtol=1e-3), \
        "Pallas kernel (f32) output mismatch vs reference"
    assert np.allclose(np.asarray(out_bf16), np.asarray(ref), atol=5e-3, rtol=5e-2), \
        "Pallas kernel (bf16 streaming) output mismatch vs reference"
    print("KERNEL_OK")
</pallas_src>

<mosaic_0001>
module attributes {stable_mosaic.version = 11 : i64} {
  func.func @tucker_y_kernel(%arg0: memref<8x16xf32, #tpu.memory_space<vmem>>, %arg1: memref<8x16xf32, #tpu.memory_space<vmem>>, %arg2: memref<8x16xf32, #tpu.memory_space<vmem>>, %arg3: memref<16x16xf32, #tpu.memory_space<vmem>>, %arg4: memref<16x16xf32, #tpu.memory_space<vmem>>, %arg5: memref<16x16xf32, #tpu.memory_space<vmem>>, %arg6: memref<16x16xf32, #tpu.memory_space<vmem>>, %arg7: memref<2x16xf32, #tpu.memory_space<vmem>>, %arg8: memref<16x256xf32, #tpu.memory_space<vmem>>, %arg9: memref<16x256xf32, #tpu.memory_space<vmem>>, %arg10: memref<2x256xf32, #tpu.memory_space<vmem>>, %arg11: memref<16x256xf32, #tpu.memory_space<vmem>>, %arg12: memref<256x16xf32, #tpu.memory_space<vmem>>, %arg13: memref<2x16xf32, #tpu.memory_space<vmem>>, %arg14: memref<8x16xf32, #tpu.memory_space<vmem>>) attributes {dimension_semantics = [], scalar_prefetch = 0 : i64, scratch_operands = 0 : i64, tpu.core_type = #tpu.core_type<tc>} {
    %c0 = arith.constant 0 : index
    %c0_0 = arith.constant 0 : index
    %0 = vector.load %arg0[%c0, %c0_0] : memref<8x16xf32, #tpu.memory_space<vmem>>, vector<8x16xf32>
    %c0_1 = arith.constant 0 : index
    %c0_2 = arith.constant 0 : index
    %1 = vector.load %arg7[%c0_1, %c0_2] : memref<2x16xf32, #tpu.memory_space<vmem>>, vector<1x16xf32>
    %2 = vector.broadcast %1 : vector<1x16xf32> to vector<8x16xf32>
    %3 = arith.mulf %0, %2 : vector<8x16xf32>
    %c1 = arith.constant 1 : index
    %c0_3 = arith.constant 0 : index
    %4 = vector.load %arg7[%c1, %c0_3] : memref<2x16xf32, #tpu.memory_space<vmem>>, vector<1x16xf32>
    %5 = vector.broadcast %4 : vector<1x16xf32> to vector<8x16xf32>
    %6 = arith.addf %3, %5 : vector<8x16xf32>
    %c0_4 = arith.constant 0 : index
    %c0_5 = arith.constant 0 : index
    %7 = vector.load %arg1[%c0_4, %c0_5] : memref<8x16xf32, #tpu.memory_space<vmem>>, vector<8x16xf32>
    %c0_6 = arith.constant 0 : index
    %c0_7 = arith.constant 0 : index
    %8 = vector.load %arg3[%c0_6, %c0_7] : memref<16x16xf32, #tpu.memory_space<vmem>>, vector<16x16xf32>
    %cst = arith.constant dense<0.000000e+00> : vector<8x16xf32>
    %9 = tpu.matmul %7, %8, %cst {dimension_numbers = #tpu.dot_dimension_numbers<[1], [0], [0], [1], [0, 0, 1, 1], [], []>} : vector<8x16xf32>, vector<16x16xf32>, vector<8x16xf32> -> vector<8x16xf32>
    %c0_8 = arith.constant 0 : index
    %c0_9 = arith.constant 0 : index
    %10 = vector.load %arg4[%c0_8, %c0_9] : memref<16x16xf32, #tpu.memory_space<vmem>>, vector<16x16xf32>
    %cst_10 = arith.constant dense<0.000000e+00> : vector<8x16xf32>
    %11 = tpu.matmul %6, %10, %cst_10 {dimension_numbers = #tpu.dot_dimension_numbers<[1], [0], [0], [1], [0, 0, 1, 1], [], []>} : vector<8x16xf32>, vector<16x16xf32>, vector<8x16xf32> -> vector<8x16xf32>
    %c0_11 = arith.constant 0 : index
    %c0_12 = arith.constant 0 : index
    %12 = vector.load %arg2[%c0_11, %c0_12] : memref<8x16xf32, #tpu.memory_space<vmem>>, vector<8x16xf32>
    %c0_13 = arith.constant 0 : index
    %c0_14 = arith.constant 0 : index
    %13 = vector.load %arg6[%c0_13, %c0_14] : memref<16x16xf32, #tpu.memory_space<vmem>>, vector<16x16xf32>
    %cst_15 = arith.constant dense<0.000000e+00> : vector<8x16xf32>
    %14 = tpu.matmul %12, %13, %cst_15 {dimension_numbers = #tpu.dot_dimension_numbers<[1], [0], [0], [1], [0, 0, 1, 1], [], []>} : vector<8x16xf32>, vector<16x16xf32>, vector<8x16xf32> -> vector<8x16xf32>
    %c0_16 = arith.constant 0 : index
    %c0_17 = arith.constant 0 : index
    %15 = vector.load %arg8[%c0_16, %c0_17] : memref<16x256xf32, #tpu.memory_space<vmem>>, vector<16x256xf32>
    %cst_18 = arith.constant dense<0.000000e+00> : vector<8x256xf32>
    %16 = tpu.matmul %11, %15, %cst_18 {dimension_numbers = #tpu.dot_dimension_numbers<[1], [0], [0], [1], [0, 0, 1, 1], [], []>} : vector<8x16xf32>, vector<16x256xf32>, vector<8x256xf32> -> vector<8x256xf32>
    %17 = arith.mulf %11, %9 : vector<8x16xf32>
    %c0_19 = arith.constant 0 : index
    %c0_20 = arith.constant 0 : index
    %18 = vector.load %arg9[%c0_19, %c0_20] : memref<16x256xf32, #tpu.memory_space<vmem>>, vector<16x256xf32>
    %cst_21 = arith.constant dense<0.000000e+00> : vector<8x256xf32>
    %19 = tpu.matmul %17, %18, %cst_21 {dimension_numbers = #tpu.dot_dimension_numbers<[1], [0], [0], [1], [0, 0, 1, 1], [], []>} : vector<8x16xf32>, vector<16x256xf32>, vector<8x256xf32> -> vector<8x256xf32>
    %20 = arith.addf %16, %19 : vector<8x256xf32>
    %c0_22 = arith.constant 0 : index
    %c0_23 = arith.constant 0 : index
    %21 = vector.load %arg10[%c0_22, %c0_23] : memref<2x256xf32, #tpu.memory_space<vmem>>, vector<1x256xf32>
    %22 = vector.broadcast %21 : vector<1x256xf32> to vector<8x256xf32>
    %23 = arith.mulf %20, %22 : vector<8x256xf32>
    %c1_24 = arith.constant 1 : index
    %c0_25 = arith.constant 0 : index
    %24 = vector.load %arg10[%c1_24, %c0_25] : memref<2x256xf32, #tpu.memory_space<vmem>>, vector<1x256xf32>
    %25 = vector.broadcast %24 : vector<1x256xf32> to vector<8x256xf32>
    %26 = arith.addf %23, %25 : vector<8x256xf32>
    %c0_26 = arith.constant 0 : index
    %c0_27 = arith.constant 0 : index
    %27 = vector.load %arg11[%c0_26, %c0_27] : memref<16x256xf32, #tpu.memory_space<vmem>>, vector<16x256xf32>
    %cst_28 = arith.constant dense<0.000000e+00> : vector<8x256xf32>
    %28 = tpu.matmul %14, %27, %cst_28 {dimension_numbers = #tpu.dot_dimension_numbers<[1], [0], [0], [1], [0, 0, 1, 1], [], []>} : vector<8x16xf32>, vector<16x256xf32>, vector<8x256xf32> -> vector<8x256xf32>
    %29 = arith.mulf %26, %28 : vector<8x256xf32>
    %c0_29 = arith.constant 0 : index
    %c0_30 = arith.constant 0 : index
    %30 = vector.load %arg12[%c0_29, %c0_30] : memref<256x16xf32, #tpu.memory_space<vmem>>, vector<256x16xf32>
    %cst_31 = arith.constant dense<0.000000e+00> : vector<8x16xf32>
    %31 = tpu.matmul %29, %30, %cst_31 {dimension_numbers = #tpu.dot_dimension_numbers<[1], [0], [0], [1], [0, 0, 1, 1], [], []>} : vector<8x256xf32>, vector<256x16xf32>, vector<8x16xf32> -> vector<8x16xf32>
    %c0_32 = arith.constant 0 : index
    %c0_33 = arith.constant 0 : index
    %32 = vector.load %arg13[%c0_32, %c0_33] : memref<2x16xf32, #tpu.memory_space<vmem>>, vector<1x16xf32>
    %33 = vector.broadcast %32 : vector<1x16xf32> to vector<8x16xf32>
    %34 = arith.mulf %31, %33 : vector<8x16xf32>
    %c1_34 = arith.constant 1 : index
    %c0_35 = arith.constant 0 : index
    %35 = vector.load %arg13[%c1_34, %c0_35] : memref<2x16xf32, #tpu.memory_space<vmem>>, vector<1x16xf32>
    %36 = vector.broadcast %35 : vector<1x16xf32> to vector<8x16xf32>
    %37 = arith.addf %34, %36 : vector<8x16xf32>
    %c0_36 = arith.constant 0 : index
    %c0_37 = arith.constant 0 : index
    %38 = vector.load %arg5[%c0_36, %c0_37] : memref<16x16xf32, #tpu.memory_space<vmem>>, vector<16x16xf32>
    %cst_38 = arith.constant dense<0.000000e+00> : vector<8x16xf32>
    %39 = tpu.matmul %37, %38, %cst_38 {dimension_numbers = #tpu.dot_dimension_numbers<[1], [1], [0], [0], [0, 0, 1, 0], [], []>} : vector<8x16xf32>, vector<16x16xf32>, vector<8x16xf32> -> vector<8x16xf32>
    %c0_39 = arith.constant 0 : index
    %c0_40 = arith.constant 0 : index
    %40 = vector.load %arg14[%c0_39, %c0_40] : memref<8x16xf32, #tpu.memory_space<vmem>>, vector<8x16xf32>
    tpu.vector_store %arg14[%c0_39, %c0_40], %39 {strides = array<i32>} : memref<8x16xf32, #tpu.memory_space<vmem>>, vector<8x16xf32>,
    return
  }
}

</mosaic_0001>

<bundles_post_ra>
// kernel: tpu_custom_call.1
= control target key start
LH: loop header
LB: loop body
LE: loop exit
PB: predicated region body
PF: predicated region fallthrough
CT: control target
= control target key end

     0   :  { %v941_v2 = vmov 0.0|0.0   ;;  %vm942_vm0 = vmmov 0   ;;  %v943_v4 = vmov 0.0   ;;  %vm64_vm1 = vcmask 130048   ;;  %s1240_s0 = inlined_call_operand.vmem [shape: f32[8,16], index: 0, kind: input, shape index: {}]   ;;  %s1241_s1 = inlined_call_operand.vmem [shape: f32[8,16], index: 1, kind: input, shape index: {}]   ;;  %s1242_s2 = inlined_call_operand.vmem [shape: f32[8,16], index: 2, kind: input, shape index: {}]   ;;  %s1243_s3 = inlined_call_operand.vmem [shape: f32[16,16], index: 3, kind: input, shape index: {}]   ;;  %s1244_s4 = inlined_call_operand.vmem [shape: f32[16,16], index: 4, kind: input, shape index: {}]   ;;  %s1245_s5 = inlined_call_operand.vmem [shape: f32[16,16], index: 5, kind: input, shape index: {}]   ;;  %s1246_s6 = inlined_call_operand.vmem [shape: f32[16,16], index: 6, kind: input, shape index: {}]   ;;  %s1247_s7 = inlined_call_operand.vmem [shape: f32[2,16], index: 7, kind: input, shape index: {}]   ;;  %s1248_s8 = inlined_call_operand.vmem [shape: f32[16,256], index: 8, kind: input, shape index: {}]   ;;  %s1249_s9 = inlined_call_operand.vmem [shape: f32[16,256], index: 9, kind: input, shape index: {}]   ;;  %s1250_s10 = inlined_call_operand.vmem [shape: f32[2,256], index: 10, kind: input, shape index: {}]   ;;  %s1251_s11 = inlined_call_operand.vmem [shape: f32[16,256], index: 11, kind: input, shape index: {}]   ;;  %s1252_s12 = inlined_call_operand.vmem [shape: f32[256,16], index: 12, kind: input, shape index: {}]   ;;  %s1253_s13 = inlined_call_operand.vmem [shape: f32[2,16], index: 13, kind: input, shape index: {}]   ;;  %s1254_s14 = inlined_call_operand.hbm [shape: f32[8,16], index: 14, kind: output, shape index: {}]  }
   0x1   :  { %v62_v0 = vld [vmem:[%s1243_s3] sm:$0xff]  ;;  %v63_v1 = vld [vmem:[%s1243_s3 + $0x8] sm:$0xff]  ;;  %854 = vmatprep.subr.bf16.mxu1 %v941_v2  ;;  %830 = vmatprep.mubr.msk.f32.mxu1 %vm942_vm0, %v943_v4 }
   0x2   :  { %v855_v3 = vpack.c.bf16 %v63_v1, %v62_v0  ;;  %v138_v5 = vld [vmem:[%s1244_s4] sm:$0xff]  ;;  %v139_v6 = vld [vmem:[%s1244_s4 + $0x8] sm:$0xff] }
   0x3   :  { %v48_v7 = vld [vmem:[%s1240_s0] sm:$0xff]  ;;  %v858_v10 = vpack.c.bf16 %v139_v6, %v138_v5 }
   0x4   :  { %v765_v8 = vld [vmem:[%s1247_s7] ss:$0 sm:$0xff]  ;;  %856 = vmatpush3.bf16.msra.mxu1 %v855_v3  ;;  %v766_v12 = vld [vmem:[%s1247_s7 + $0x1] ss:$0 sm:$0xff] }
   0x5   :  { %v61_v9 = vld [vmem:[%s1241_s1] sm:$0xff]  ;;  %v54_v11 = vmul.f32 %v765_v8, %v48_v7 }
   0x6   :  { %19 = vsyncpa [#allocation3], 0  ;;  %857 = vmatprep.subr.bf16.mxu1 %v941_v2  ;;  %v214_v13 = vld [vmem:[%s1246_s6] sm:$0xff]  ;;  %v215_v14 = vld [vmem:[%s1246_s6 + $0x8] sm:$0xff] }
   0x7   :  { %831 = vmatmul.mubr.msk.f32.vlgmr.msra.gmra.mrb[0].mxu1 %vm64_vm1, %v61_v9  ;;  %v60_v15 = vadd.f32 %v766_v12, %v54_v11  ;;  %v861_v16 = vpack.c.bf16 %v215_v14, %v214_v13  ;;  %v213_v17 = vld [vmem:[%s1242_s2] sm:$0xff]  ;;  %v295_v18 = vld [vmem:[%s1249_s9 + $0x8] sm:$0xff]  ;;  %v297_v19 = vld [vmem:[%s1249_s9 + $0x18] sm:$0xff] }
   0x8   :  { %859 = vmatpush3.bf16.msra.mxu1 %v858_v10  ;;  %837 = vmatprep.mubr.msk.f32.mxu1 %vm942_vm0, %v943_v4  ;;  %v863_v20 = vpack.c.bf16 %v297_v19, %v295_v18  ;;  %v294_v21 = vld [vmem:[%s1249_s9] sm:$0xff]  ;;  %v296_v22 = vld [vmem:[%s1249_s9 + $0x10] sm:$0xff]  ;;  %v290_v24 = vld [vmem:[%s1248_s8 + $0x8] sm:$0xff] }
   0x9   :  { %860 = vmatprep.subr.bf16.mxu1 %v941_v2  ;;  %v865_v23 = vpack.c.bf16 %v296_v22, %v294_v21  ;;  %v292_v25 = vld [vmem:[%s1248_s8 + $0x18] sm:$0xff]  ;;  %v571_v27 = vld [vmem:[%s1252_s12 + $0x80] sm:$0xff]  ;;  %v572_v28 = vld [vmem:[%s1252_s12 + $0x88] sm:$0xff] }
   0xa   :  { %v867_v26 = vpack.c.bf16 %v292_v25, %v290_v24  ;;  %v555_v29 = vld [vmem:[%s1252_s12] sm:$0xff]  ;;  %v875_v30 = vpack.c.bf16 %v572_v28, %v571_v27  ;;  %v556_v31 = vld [vmem:[%s1252_s12 + $0x8] sm:$0xff]  ;;  %v573_v32 = vld [vmem:[%s1252_s12 + $0x90] sm:$0xff]  ;;  %v448_v27 = vlaneseq }
   0xb   :  { %838 = vmatmul.mubr.msk.f32.vlgmr.msra.gmra.mrb[2].mxu1 %vm64_vm1, %v60_v15  ;;  %v574_v33 = vld [vmem:[%s1252_s12 + $0x98] sm:$0xff]  ;;  %v877_v34 = vpack.c.bf16 %v556_v31, %v555_v29  ;;  %v557_v36 = vld [vmem:[%s1252_s12 + $0x10] sm:$0xff]  ;;  %v575_v38 = vld [vmem:[%s1252_s12 + $0xa0] sm:$0xff] }
   0xc   :  { %862 = vmatpush3.bf16.msra.mxu1 %v861_v16  ;;  %844 = vmatprep.mubr.msk.f32.mxu1 %vm942_vm0, %v943_v4  ;;  %v879_v35 = vpack.c.bf16 %v574_v33, %v573_v32  ;;  %v558_v37 = vld [vmem:[%s1252_s12 + $0x18] sm:$0xff]  ;;  %v576_v39 = vld [vmem:[%s1252_s12 + $0xa8] sm:$0xff]  ;;  %v559_v42 = vld [vmem:[%s1252_s12 + $0x20] sm:$0xff]  ;;  %v449_v28 = vshrl.u32 %v448_v27, 7 }
   0xd   :  { %864 = vmatprep.subr.bf16.mxu1 %v863_v20  ;;  %876 = vmatprep.subr.bf16.mxu0 %v875_v30  ;;  %v881_v40 = vpack.c.bf16 %v558_v37, %v557_v36  ;;  %v883_v41 = vpack.c.bf16 %v576_v39, %v575_v38  ;;  %v560_v43 = vld [vmem:[%s1252_s12 + $0x28] sm:$0xff]  ;;  %v577_v44 = vld [vmem:[%s1252_s12 + $0xb0] sm:$0xff]  ;;  %v578_v45 = vld [vmem:[%s1252_s12 + $0xb8] sm:$0xff] }
   0xe   :  { %878 = vmatpush3.bf16.msra.mxu0 %v877_v34  ;;  %v885_v46 = vpack.c.bf16 %v560_v43, %v559_v42  ;;  %v887_v47 = vpack.c.bf16 %v578_v45, %v577_v44  ;;  %v561_v48 = vld [vmem:[%s1252_s12 + $0x30] sm:$0xff]  ;;  %v562_v49 = vld [vmem:[%s1252_s12 + $0x38] sm:$0xff]  ;;  %v579_v50 = vld [vmem:[%s1252_s12 + $0xc0] sm:$0xff]  ;;  %v450_v29 = vsub.s32 0, %v449_v28  ;;  %v454_v31 = vsub.s32 1, %v449_v28 }
   0xf   :  { %845 = vmatmul.mubr.msk.f32.vlgmr.msra.gmra.mrb[4].mxu1 %vm64_vm1, %v213_v17  ;;  %880 = vmatprep.subr.bf16.mxu0 %v879_v35  ;;  %v580_v51 = vld [vmem:[%s1252_s12 + $0xc8] sm:$0xff]  ;;  %v889_v52 = vpack.c.bf16 %v562_v49, %v561_v48  ;;  %v563_v54 = vld [vmem:[%s1252_s12 + $0x40] sm:$0xff]  ;;  %v581_v56 = vld [vmem:[%s1252_s12 + $0xd0] sm:$0xff] }
  0x10   :  { %365 = vmatprep.mubr.f32.mxu1 %v943_v4  ;;  %866 = vmatpush1.bf16.msra.mxu1 %v865_v23  ;;  %v891_v53 = vpack.c.bf16 %v580_v51, %v579_v50  ;;  %v564_v55 = vld [vmem:[%s1252_s12 + $0x48] sm:$0xff]  ;;  %v582_v57 = vld [vmem:[%s1252_s12 + $0xd8] sm:$0xff]  ;;  %v565_v60 = vld [vmem:[%s1252_s12 + $0x50] sm:$0xff] }
  0x11   :  { %868 = vmatprep.subr.bf16.mxu1 %v867_v26  ;;  %v893_v58 = vpack.c.bf16 %v564_v55, %v563_v54  ;;  %v895_v59 = vpack.c.bf16 %v582_v57, %v581_v56  ;;  %v566_v61 = vld [vmem:[%s1252_s12 + $0x58] sm:$0xff]  ;;  %v289_v1 = vld [vmem:[%s1248_s8] sm:$0xff]  ;;  %v291_v3 = vld [vmem:[%s1248_s8 + $0x10] sm:$0xff] }
  0x12   :  { %882 = vmatpush3.bf16.msra.mxu0 %v881_v40  ;;  %v897_v62 = vpack.c.bf16 %v566_v61, %v565_v60  ;;  %v476_v5 = vld [vmem:[%s1251_s11 + $0x8] sm:$0xff]  ;;  %v478_v6 = vld [vmem:[%s1251_s11 + $0x18] sm:$0xff]  ;;  %v869_v8 = vpack.c.bf16 %v291_v3, %v289_v1  ;;  %v475_v13 = vld [vmem:[%s1251_s11] sm:$0xff] }
  0x13   :  { %884 = vmatprep.subr.bf16.mxu0 %v883_v41  ;;  %v871_v11 = vpack.c.bf16 %v478_v6, %v476_v5  ;;  %v477_v14 = vld [vmem:[%s1251_s11 + $0x10] sm:$0xff]  ;;  %v583_v17 = vld [vmem:[%s1252_s12 + $0xe0] sm:$0xff]  ;;  %v584_v18 = vld [vmem:[%s1252_s12 + $0xe8] sm:$0xff] }
  0x14   :  { %v873_v16 = vpack.c.bf16 %v477_v14, %v475_v13  ;;  %v899_v19 = vpack.c.bf16 %v584_v18, %v583_v17  ;;  %v567_v20 = vld [vmem:[%s1252_s12 + $0x60] sm:$0xff]  ;;  %v586_v22 = vld [vmem:[%s1252_s12 + $0xf8] sm:$0xff]  ;;  %v569_v24 = vld [vmem:[%s1252_s12 + $0x70] sm:$0xff] }
  0x15   :  { %v570_v25 = vld [vmem:[%s1252_s12 + $0x78] sm:$0xff]  ;;  %v446_v30 = vld [vmem:[%s1250_s10] ss:$2 sm:$0x3]  ;;  %v670_v48 = vld [vmem:[%s1245_s5 + $0x8] sm:$0xff] }
  0x16   :  { %886 = vmatpush3.bf16.msra.mxu0 %v885_v46  ;;  %v905_v26 = vpack.c.bf16 %v570_v25, %v569_v24  ;;  %v772_v32 = vld [vmem:[%s1250_s10 + $0x1] ss:$2 sm:$0x3]  ;;  %v451_v33 = vrot.slane %v446_v30, %v450_v29  ;;  %v455_v34 = vrot.slane %v446_v30, %v454_v31  ;;  %vm909_vm2 = vmpackc.low %vm64_vm1, %vm64_vm1 }
  0x17   :  { %888 = vmatprep.subr.bf16.mxu0 %v887_v47  ;;  %v466_v35 = vrot.slane %v772_v32, %v450_v29  ;;  %v470_v37 = vrot.slane %v772_v32, %v454_v31  ;;  %v669_v47 = vld [vmem:[%s1245_s5] sm:$0xff]  ;;  %s944_s5 = smov [#allocation2]  }
  0x18   :  { %v908_v49 = vpack.c.bf16 %v670_v48, %v669_v47  ;;  %v775_v54 = vld [vmem:[%s1253_s13 + $0x1] ss:$0 sm:$0xff]  ;;  %s757_s7 = sshll.u32 %s944_s5, 4  ;;  %s758_s7 = int_to_ptr.vmem [resolvable:$true] %s757_s7 }
  0x19   :  { %s917_s6 = scalar_lea.vmem %s758_s7, 128  ;;  %p922_p1 = scmp.lt.s32.totalorder %s758_s7, %s758_s7 }
  0x1a   :  { %890 = vmatpush3.bf16.msra.mxu0 %v889_v52  ;;  %v774_v52 = vld [vmem:[%s1253_s13] ss:$0 sm:$0xff]  ;;  %p918_p0 = scmp.ne.s32.totalorder %s758_s7, %s917_s6  ;;  %p923_p2 = scmp.lt.s32.totalorder %s917_s6, %s917_s6 }
  0x1b   :  { %892 = vmatprep.subr.bf16.mxu0 %v891_v53 }
  0x1c   :  { %p924_p3 = por %p923_p2, %p922_p1 }
  0x1e   :  { %894 = vmatpush3.bf16.msra.mxu0 %v893_v58  ;;  %p925_p4 = pnand %p924_p3, %p918_p0 }
  0x1f   :  { %896 = vmatprep.subr.bf16.mxu0 %v895_v59 }
  0x22   :  { %898 = vmatpush3.bf16.msra.mxu0 %v897_v62 }
  0x23   :  { %900 = vmatprep.subr.bf16.mxu0 %v899_v19 }
  0xda   :  { %v134_v63 = vpop.f32.mrb[0].mxu1 }
  0xdb   :  { %v832_v0 = vpop.f32.mrb[1].mxu1 }
  0xde   :  { %v209_v7 = vpop.f32.mrb[2].mxu1 }
  0xdf   :  { %v293_v9 = vmul.f32 %v209_v7, %v134_v63  ;;  %v839_v10 = vpop.f32.mrb[3].mxu1 }
  0xe1   :  { %770 = vmatmul.mubr.msk.f32.vlgmr.msra.gmra.mrb[6].mxu1 %vm64_vm1, %v293_v9 }
  0xe2   :  { %870 = vmatpush1.bf16.msra.mxu1 %v869_v8  ;;  %439 = vmatprep.mubr.f32.mxu1 %v943_v4  ;;  %v285_v12 = vpop.f32.mrb[4].mxu1 }
  0xe3   :  { %872 = vmatprep.subr.bf16.mxu1 %v871_v11  ;;  %v846_v15 = vpop.f32.mrb[5].mxu1 }
  0xe9   :  { %771 = vmatmul.mubr.msk.f32.vlgmr.msra.gmra.mrb[6].mxu1 %vm64_vm1, %v209_v7 }
  0xea   :  { %874 = vmatpush1.bf16.msra.mxu1 %v873_v16  ;;  %546 = vmatprep.mubr.f32.mxu1 %v943_v4 }
  0xeb   :  { %907 = vmatprep.subr.bf16.mxu1 %v941_v2  ;;  %v568_v2 = vld [vmem:[%s1252_s12 + $0x68] sm:$0xff] }
  0xec   :  { %v901_v21 = vpack.c.bf16 %v568_v2, %v567_v20 }
  0xed   :  { %773 = vmatmul.mubr.msk.f32.vlgmr.msra.gmra.mrb[8].mxu1 %vm64_vm1, %v285_v12 }
  0xee   :  { %851 = vmatprep.mubr.msk.f32.mxu1 %vm942_vm0, %v943_v4  ;;  %902 = vmatpush3.bf16.msra.mxu0 %v901_v21  ;;  %v585_v4 = vld [vmem:[%s1252_s12 + $0xf0] sm:$0xff] }
  0xef   :  { %v903_v23 = vpack.c.bf16 %v586_v22, %v585_v4 }
  0xf1   :  { %904 = vmatprep.subr.bf16.mxu0 %v903_v23 }
  0xf2   :  { %906 = vmatpush3.bf16.msra.mxu0 %v905_v26 }
  0xf3   :  { %910 = vmatpush3.bf16.xpose.msk.msra.mxu1 %vm909_vm2, %v908_v49 }
 0x1bc   :  { %v441_v36 = vpop.f32.mrb[6].mxu1 }
 0x1bd   :  { %v458_v38 = vmul.f32 %v451_v33, %v441_v36  ;;  %v443_v39 = vpop.f32.mrb[7].mxu1 }
 0x1be   :  { %v459_v40 = vmul.f32 %v455_v34, %v443_v39 }
 0x1bf   :  { %v473_v41 = vadd.f32 %v466_v35, %v458_v38 }
 0x1c0   :  { %v548_v42 = vpop.f32.mrb[8].mxu1  ;;  %v474_v43 = vadd.f32 %v470_v37, %v459_v40 }
 0x1c1   :  { %v553_v44 = vmul.f32 %v548_v42, %v473_v41  ;;  %v550_v45 = vpop.f32.mrb[9].mxu1 }
 0x1c2   :  { %v554_v46 = vmul.f32 %v550_v45, %v474_v43 }
 0x1c4   :  { %651 = vmatprep.mubr.f32.mxu0 %v554_v46 }
 0x1c5   :  { %652 = vmatmul.mubr.f32.vlgmr.msra.gmra.mrb[0].mxu0 %v553_v44 }
 0x298   :  { %v820_v50 = vpop.f32.mrb[0].mxu0 }
 0x299   :  { %v821_v51 = vpop.f32.mrb[1].mxu0 }
 0x29a   :  { %v822_v53 = vadd.f32 %v821_v51, %v820_v50 }
 0x29c   :  { %v662_v55 = vmul.f32 %v822_v53, %v774_v52 }
 0x29e   :  { %v668_v56 = vadd.f32 %v775_v54, %v662_v55 }
 0x2a0   :  { %852 = vmatmul.mubr.msk.f32.vlgmr.msra.gmra.mrb[10].mxu1 %vm64_vm1, %v668_v56 }
 0x373   :  { %v746_v57 = vpop.f32.mrb[10].mxu1 }
 0x374   :  { %750 = vst.msk [vmem:[#allocation2] sm:$0xff] %vm64_vm1, %v746_v57  ;;  %v853_v58 = vpop.f32.mrb[11].mxu1 }
 0x375   :  { %928 = shalt.err (!%p925_p4)
}
 0x376   :  { %s929_s11 = scalar_lea.hbm %s1254_s14, 128 }
 0x377   :  { %p930_p5 = scmp.ne.s32.totalorder %s1254_s14, %s929_s11  ;;  %p933_p6 = scmp.lt.u32.totalorder %s929_s11, %s1254_s14 }
 0x379   :  { %p935_p7 = pnand %p933_p6, %p930_p5 }
 0x37b   :  { %938 = shalt.err (!%p935_p7)
}
 0x37c   :  { %760 = dma.vmem_to_hbm [thread:$0]  %s758_s7, 128, %s1254_s14, [#allocation3]  }
 0x37d   :  { %939 = dma.done.wait [#allocation3], 128  }
 0x37e   :  { %940 = vsyncadd [#allocation3], 4294967168 }
 0x37f   :  { %764 = vsyncpa [#allocation3], 1 }

</bundles_post_ra>
